<compile_context>
chip_gen: v7x
topology: tpu7x:2x2x1
jax: 0.10.0
libtpu: 0.0.40
codegen_flags: <defaults>
</compile_context>

<pallas_src>
import jax
import jax.numpy as jnp
from jax.experimental import pallas as pl
from jax.experimental.pallas import tpu as pltpu

HALF = 13 * 7              # 91  (one input channel, flattened)
IN_FEATURES = 2 * HALF     # 182
HIDDEN = 128
OUT = 1
TILE_M = 256               # batch tile for the grid path


def _disc_kernel(xc_ref, xy_ref, w1a_ref, w1b_ref, b1_ref, w2_ref, b2_ref, o_ref):
    # ---- Layer 1: fused concat + Linear(182 -> 128), bf16 MXU, f32 accum ----
    xc = xc_ref[...].astype(jnp.bfloat16)            # (tm, 91)
    xy = xy_ref[...].astype(jnp.bfloat16)            # (tm, 91)
    h = jnp.dot(xc, w1a_ref[...], preferred_element_type=jnp.float32)
    h = h + jnp.dot(xy, w1b_ref[...], preferred_element_type=jnp.float32)
    h = h + b1_ref[...]                              # (tm, 128) f32

    # ---- LeakyReLU(0.2), f32 on the VPU ----
    h = jnp.where(h > 0, h, 0.2 * h)

    # ---- Layer 2: Linear(128 -> 1) as a lane reduction (avoids N=1 matmul) ----
    z = jnp.sum(h * w2_ref[...], axis=-1, keepdims=True) + b2_ref[...]   # (tm, 1)

    # ---- Sigmoid: EUP exp + EUP approx reciprocal ----
    o_ref[...] = pl.reciprocal(1.0 + jnp.exp(-z), approx=True).astype(o_ref.dtype)


def discriminator_forward(cond, y, params):
    """cond, y: (B, 1, 13, 7) float32 (NCHW). Returns (B, 1) float32."""
    w1a, w1b, b1, w2, b2 = params
    B = cond.shape[0]

    # Free bitcast reshapes (no concat, no HBM round-trip of the activation).
    xc = cond.reshape(B, HALF)
    xy = y.reshape(B, HALF)

    if B <= TILE_M:
        tm, Bp, grid = B, B, (1,)                 # single full-array block
    else:
        tm = TILE_M
        Bp = -(-B // tm) * tm                     # round up to tile multiple
        if Bp != B:
            pad = Bp - B
            xc = jnp.pad(xc, ((0, pad), (0, 0)))
            xy = jnp.pad(xy, ((0, pad), (0, 0)))
        grid = (Bp // tm,)

    out = pl.pallas_call(
        _disc_kernel,
        out_shape=jax.ShapeDtypeStruct((Bp, OUT), jnp.float32),
        grid=grid,
        in_specs=[
            pl.BlockSpec((tm, HALF), lambda i: (i, 0)),       # cond half
            pl.BlockSpec((tm, HALF), lambda i: (i, 0)),       # y half
            pl.BlockSpec((HALF, HIDDEN), lambda i: (0, 0)),   # W1[:91]   (bf16)
            pl.BlockSpec((HALF, HIDDEN), lambda i: (0, 0)),   # W1[91:]   (bf16)
            pl.BlockSpec((1, HIDDEN), lambda i: (0, 0)),      # b1        (f32)
            pl.BlockSpec((1, HIDDEN), lambda i: (0, 0)),      # w2 row    (f32)
            pl.BlockSpec((1, OUT), lambda i: (0, 0)),         # b2        (f32)
        ],
        out_specs=pl.BlockSpec((tm, OUT), lambda i: (i, 0)),
        compiler_params=pltpu.CompilerParams(
            dimension_semantics=("parallel",)),
    )(xc, xy, w1a, w1b, b1, w2, b2)
    return out[:B]


def init_params(key):
    """Mirror nn.Linear default init (uniform +/- 1/sqrt(fan_in)).

    W1 is stored transposed (in_features, out_features) and split into its
    cond / y halves; the MXU operand halves are kept in bf16, biases and the
    second-layer row vector stay f32 (used on the VPU/XLU path).
    """
    k1, k2, k3, k4 = jax.random.split(key, 4)
    lim1 = 1.0 / jnp.sqrt(jnp.float32(IN_FEATURES))
    lim2 = 1.0 / jnp.sqrt(jnp.float32(HIDDEN))
    w1 = jax.random.uniform(k1, (IN_FEATURES, HIDDEN), jnp.float32, -lim1, lim1)
    b1 = jax.random.uniform(k2, (1, HIDDEN), jnp.float32, -lim1, lim1)
    w2 = jax.random.uniform(k3, (1, HIDDEN), jnp.float32, -lim2, lim2)  # row vector
    b2 = jax.random.uniform(k4, (1, OUT), jnp.float32, -lim2, lim2)
    w1a = w1[:HALF].astype(jnp.bfloat16)    # rows for the cond channel
    w1b = w1[HALF:].astype(jnp.bfloat16)    # rows for the y channel
    return (w1a, w1b, b1, w2, b2)


def _reference(cond, y, params):
    """Pure-JAX reference with the same (bf16) weights, f32 math."""
    w1a, w1b, b1, w2, b2 = params
    B = cond.shape[0]
    x = jnp.concatenate([cond.reshape(B, -1), y.reshape(B, -1)], axis=1)
    w1 = jnp.concatenate([w1a, w1b], axis=0).astype(jnp.float32)
    h = x @ w1 + b1
    h = jnp.where(h > 0, h, 0.2 * h)
    z = h @ w2.astype(jnp.float32).T + b2
    return jax.nn.sigmoid(z)


if __name__ == "__main__":
    key = jax.random.PRNGKey(0)
    k_params, k_cond, k_y = jax.random.split(key, 3)

    params = init_params(k_params)

    # Small case (single-block path).
    B = 2
    cond = jax.random.normal(k_cond, (B, 1, 13, 7), jnp.float32)
    y = jax.random.normal(k_y, (B, 1, 13, 7), jnp.float32)

    out = jax.block_until_ready(discriminator_forward(cond, y, params))
    ref = _reference(cond, y, params)
    assert out.shape == (B, 1), out.shape
    assert bool(jnp.allclose(out, ref, rtol=0.0, atol=2e-2)), (out, ref)

    # Larger case (exercises the tiled / padded grid path).
    B2 = 300
    cond2 = jax.random.normal(k_cond, (B2, 1, 13, 7), jnp.float32)
    y2 = jax.random.normal(k_y, (B2, 1, 13, 7), jnp.float32)
    out2 = jax.block_until_ready(discriminator_forward(cond2, y2, params))
    ref2 = _reference(cond2, y2, params)
    assert out2.shape == (B2, 1), out2.shape
    assert bool(jnp.allclose(out2, ref2, rtol=0.0, atol=2e-2))

    print("KERNEL_OK")
</pallas_src>

<mosaic_0001>
module attributes {stable_mosaic.version = 11 : i64} {
  func.func @_disc_kernel(%arg0: i32, %arg1: memref<2x91xf32, #tpu.memory_space<vmem>>, %arg2: memref<2x91xf32, #tpu.memory_space<vmem>>, %arg3: memref<91x128xbf16, #tpu.memory_space<vmem>>, %arg4: memref<91x128xbf16, #tpu.memory_space<vmem>>, %arg5: memref<1x128xf32, #tpu.memory_space<vmem>>, %arg6: memref<1x128xf32, #tpu.memory_space<vmem>>, %arg7: memref<1x1xf32, #tpu.memory_space<vmem>>, %arg8: memref<2x1xf32, #tpu.memory_space<vmem>>) attributes {dimension_semantics = [#tpu.dimension_semantics<parallel>], iteration_bounds = array<i64: 1>, scalar_prefetch = 0 : i64, scratch_operands = 0 : i64, tpu.core_type = #tpu.core_type<tc>, window_params = [{transform_indices = @transform_0, window_bounds = array<i64: 2, 91>}, {transform_indices = @transform_1, window_bounds = array<i64: 2, 91>}, {pipeline_mode = #tpu.pipeline_mode<synchronous>, transform_indices = @transform_2, window_bounds = array<i64: 91, 128>}, {pipeline_mode = #tpu.pipeline_mode<synchronous>, transform_indices = @transform_3, window_bounds = array<i64: 91, 128>}, {pipeline_mode = #tpu.pipeline_mode<synchronous>, transform_indices = @transform_4, window_bounds = array<i64: 1, 128>}, {pipeline_mode = #tpu.pipeline_mode<synchronous>, transform_indices = @transform_5, window_bounds = array<i64: 1, 128>}, {pipeline_mode = #tpu.pipeline_mode<synchronous>, transform_indices = @transform_6, window_bounds = array<i64: 1, 1>}, {transform_indices = @transform_7, window_bounds = array<i64: 2, 1>}]} {
    %c0 = arith.constant 0 : index
    %c0_0 = arith.constant 0 : index
    %0 = vector.load %arg1[%c0, %c0_0] : memref<2x91xf32, #tpu.memory_space<vmem>>, vector<2x91xf32>
    %1 = arith.truncf %0 : vector<2x91xf32> to vector<2x91xbf16>
    %c0_1 = arith.constant 0 : index
    %c0_2 = arith.constant 0 : index
    %2 = vector.load %arg2[%c0_1, %c0_2] : memref<2x91xf32, #tpu.memory_space<vmem>>, vector<2x91xf32>
    %3 = arith.truncf %2 : vector<2x91xf32> to vector<2x91xbf16>
    %c0_3 = arith.constant 0 : index
    %c0_4 = arith.constant 0 : index
    %4 = vector.load %arg3[%c0_3, %c0_4] : memref<91x128xbf16, #tpu.memory_space<vmem>>, vector<91x128xbf16>
    %cst = arith.constant dense<0.000000e+00> : vector<2x128xf32>
    %5 = tpu.matmul %1, %4, %cst {dimension_numbers = #tpu.dot_dimension_numbers<[1], [0], [0], [1], [0, 0, 1, 1], [], []>} : vector<2x91xbf16>, vector<91x128xbf16>, vector<2x128xf32> -> vector<2x128xf32>
    %c0_5 = arith.constant 0 : index
    %c0_6 = arith.constant 0 : index
    %6 = vector.load %arg4[%c0_5, %c0_6] : memref<91x128xbf16, #tpu.memory_space<vmem>>, vector<91x128xbf16>
    %cst_7 = arith.constant dense<0.000000e+00> : vector<2x128xf32>
    %7 = tpu.matmul %3, %6, %cst_7 {dimension_numbers = #tpu.dot_dimension_numbers<[1], [0], [0], [1], [0, 0, 1, 1], [], []>} : vector<2x91xbf16>, vector<91x128xbf16>, vector<2x128xf32> -> vector<2x128xf32>
    %8 = arith.addf %5, %7 : vector<2x128xf32>
    %c0_8 = arith.constant 0 : index
    %c0_9 = arith.constant 0 : index
    %9 = vector.load %arg5[%c0_8, %c0_9] : memref<1x128xf32, #tpu.memory_space<vmem>>, vector<1x128xf32>
    %10 = vector.broadcast %9 : vector<1x128xf32> to vector<2x128xf32>
    %11 = arith.addf %8, %10 : vector<2x128xf32>
    %cst_10 = arith.constant 0.000000e+00 : f32
    %12 = vector.broadcast %cst_10 : f32 to vector<2x128xf32>
    %13 = arith.cmpf ogt, %11, %12 : vector<2x128xf32>
    %cst_11 = arith.constant 2.000000e-01 : f32
    %14 = vector.broadcast %cst_11 : f32 to vector<2x128xf32>
    %15 = arith.mulf %14, %11 : vector<2x128xf32>
    %16 = arith.select %13, %11, %15 : vector<2x128xi1>, vector<2x128xf32>
    %c0_12 = arith.constant 0 : index
    %c0_13 = arith.constant 0 : index
    %17 = vector.load %arg6[%c0_12, %c0_13] : memref<1x128xf32, #tpu.memory_space<vmem>>, vector<1x128xf32>
    %18 = vector.broadcast %17 : vector<1x128xf32> to vector<2x128xf32>
    %19 = arith.mulf %16, %18 : vector<2x128xf32>
    %cst_14 = arith.constant dense<0.000000e+00> : vector<2xf32>
    %20 = vector.multi_reduction <add>, %19, %cst_14 [1] : vector<2x128xf32> to vector<2xf32>
    %21 = vector.shape_cast %20 : vector<2xf32> to vector<2x1xf32>
    %c0_15 = arith.constant 0 : index
    %c0_16 = arith.constant 0 : index
    %22 = vector.load %arg7[%c0_15, %c0_16] : memref<1x1xf32, #tpu.memory_space<vmem>>, vector<1x1xf32>
    %23 = vector.broadcast %22 : vector<1x1xf32> to vector<2x1xf32>
    %24 = arith.addf %21, %23 : vector<2x1xf32>
    %cst_17 = arith.constant 0.000000e+00 : f32
    %25 = vector.broadcast %cst_17 : f32 to vector<2x1xf32>
    %26 = arith.subf %25, %24 : vector<2x1xf32>
    %27 = math.exp %26 : vector<2x1xf32>
    %cst_18 = arith.constant 1.000000e+00 : f32
    %28 = vector.broadcast %cst_18 : f32 to vector<2x1xf32>
    %29 = arith.addf %28, %27 : vector<2x1xf32>
    %30 = tpu.reciprocal %29 {approx = true} : vector<2x1xf32> -> vector<2x1xf32>
    %c0_19 = arith.constant 0 : index
    %c0_20 = arith.constant 0 : index
    %31 = vector.load %arg8[%c0_19, %c0_20] : memref<2x1xf32, #tpu.memory_space<vmem>>, vector<2x1xf32>
    tpu.vector_store %arg8[%c0_19, %c0_20], %30 {strides = array<i32>} : memref<2x1xf32, #tpu.memory_space<vmem>>, vector<2x1xf32>,
    return
  }
  func.func @transform_0(%arg0: i32) -> (i32, i32) {
    %c0_i32 = arith.constant 0 : i32
    %c0_i32_0 = arith.constant 0 : i32
    return %arg0, %c0_i32 : i32, i32
  }
  func.func @transform_1(%arg0: i32) -> (i32, i32) {
    %c0_i32 = arith.constant 0 : i32
    %c0_i32_0 = arith.constant 0 : i32
    return %arg0, %c0_i32 : i32, i32
  }
  func.func @transform_2(%arg0: i32) -> (i32, i32) {
    %c0_i32 = arith.constant 0 : i32
    %c0_i32_0 = arith.constant 0 : i32
    %c0_i32_1 = arith.constant 0 : i32
    return %c0_i32, %c0_i32_0 : i32, i32
  }
  func.func @transform_3(%arg0: i32) -> (i32, i32) {
    %c0_i32 = arith.constant 0 : i32
    %c0_i32_0 = arith.constant 0 : i32
    %c0_i32_1 = arith.constant 0 : i32
    return %c0_i32, %c0_i32_0 : i32, i32
  }
  func.func @transform_4(%arg0: i32) -> (i32, i32) {
    %c0_i32 = arith.constant 0 : i32
    %c0_i32_0 = arith.constant 0 : i32
    %c0_i32_1 = arith.constant 0 : i32
    return %c0_i32, %c0_i32_0 : i32, i32
  }
  func.func @transform_5(%arg0: i32) -> (i32, i32) {
    %c0_i32 = arith.constant 0 : i32
    %c0_i32_0 = arith.constant 0 : i32
    %c0_i32_1 = arith.constant 0 : i32
    return %c0_i32, %c0_i32_0 : i32, i32
  }
  func.func @transform_6(%arg0: i32) -> (i32, i32) {
    %c0_i32 = arith.constant 0 : i32
    %c0_i32_0 = arith.constant 0 : i32
    %c0_i32_1 = arith.constant 0 : i32
    return %c0_i32, %c0_i32_0 : i32, i32
  }
  func.func @transform_7(%arg0: i32) -> (i32, i32) {
    %c0_i32 = arith.constant 0 : i32
    %c0_i32_0 = arith.constant 0 : i32
    return %arg0, %c0_i32 : i32, i32
  }
}

</mosaic_0001>

<bundles_post_ra>
// kernel: tpu_custom_call.1
= control target key start
LH: loop header
LB: loop body
LE: loop exit
PB: predicated region body
PF: predicated region fallthrough
CT: control target
= control target key end

     0   :  { %s519_s0 = inlined_call_operand.vmem [shape: f32[2,91], index: 0, kind: input, shape index: {}]   ;;  %s520_s1 = inlined_call_operand.vmem [shape: f32[2,91], index: 1, kind: input, shape index: {}]   ;;  %s521_s2 = inlined_call_operand.hbm [shape: bf16[91,128], index: 2, kind: input, shape index: {}]   ;;  %s522_s3 = inlined_call_operand.hbm [shape: bf16[91,128], index: 3, kind: input, shape index: {}]   ;;  %s523_s4 = inlined_call_operand.vmem [shape: f32[1,128], index: 4, kind: input, shape index: {}]   ;;  %s524_s5 = inlined_call_operand.vmem [shape: f32[1,128], index: 5, kind: input, shape index: {}]   ;;  %s525_s6 = inlined_call_operand.<no memory space> [shape: f32[1,1], index: 6, kind: input, shape index: {}]   ;;  %s526_s7 = inlined_call_operand.vmem [shape: f32[2,1], index: 7, kind: output, shape index: {}]  }
   0x1   :  { %v12_v0 = vstv %s525_s6 }
   0x2   :  { %13 = vst [vmem:[#allocation2] sm:$0x1] %v12_v0 }
   0x3   :  { %14 = vsyncpa [#allocation4], 0 }
   0x4   :  { %15 = vsyncpa [#allocation6], 0  ;;  %s430_s26 = smov [#allocation3]   ;;  %s382_s30 = scalar_lea.hbm %s521_s2, 768 }
   0x5   :  { %s25_s27 = sshll.u32 %s430_s26, 4  ;;  %p383_p0 = scmp.ne.s32.totalorder %s521_s2, %s382_s30  ;;  %s26_s27 = int_to_ptr.vmem [resolvable:$true] %s25_s27 }
   0x6   :  { %p386_p1 = scmp.lt.u32.totalorder %s382_s30, %s521_s2 }
   0x8   :  { %p388_p2 = pnand %p386_p1, %p383_p0 }
   0xa   :  { %391 = shalt.err (!%p388_p2)
}
   0xb   :  { %s392_s6 = scalar_lea.vmem %s26_s27, 768  ;;  %p397_p4 = scmp.lt.s32.totalorder %s26_s27, %s26_s27 }
   0xc   :  { %p393_p3 = scmp.ne.s32.totalorder %s26_s27, %s392_s6  ;;  %p398_p5 = scmp.lt.s32.totalorder %s392_s6, %s392_s6 }
   0xe   :  { %p399_p6 = por %p398_p5, %p397_p4 }
  0x10   :  { %p400_p7 = pnand %p399_p6, %p393_p3 }
  0x12   :  { %403 = shalt.err (!%p400_p7)
}
  0x13   :  { %s431_s12 = smov 64   ;;  %s432_s13 = smov 4  }
  0x14   :  { %31 = dma.hbm_to_vmem [thread:$0]  %s521_s2, 768, %s26_s27, [#allocation4], %s431_s12, %s431_s12, %s432_s13  }
  0x15   :  { %s433_s16 = smov [#allocation5]   ;;  %s404_s20 = scalar_lea.hbm %s522_s3, 768 }
  0x16   :  { %s37_s17 = sshll.u32 %s433_s16, 4  ;;  %p405_p8 = scmp.ne.s32.totalorder %s522_s3, %s404_s20  ;;  %s38_s17 = int_to_ptr.vmem [resolvable:$true] %s37_s17 }
  0x17   :  { %p408_p9 = scmp.lt.u32.totalorder %s404_s20, %s522_s3 }
  0x19   :  { %p410_p10 = pnand %p408_p9, %p405_p8 }
  0x1b   :  { %413 = shalt.err (!%p410_p10)
}
  0x1c   :  { %s414_s25 = scalar_lea.vmem %s38_s17, 768  ;;  %p419_p12 = scmp.lt.s32.totalorder %s38_s17, %s38_s17 }
  0x1d   :  { %p415_p11 = scmp.ne.s32.totalorder %s38_s17, %s414_s25  ;;  %p420_p13 = scmp.lt.s32.totalorder %s414_s25, %s414_s25 }
  0x1f   :  { %p421_p0 = por %p420_p13, %p419_p12 }
  0x21   :  { %p422_p1 = pnand %p421_p0, %p415_p11 }
  0x23   :  { %425 = shalt.err (!%p422_p1)
}
  0x24   :  { %43 = dma.hbm_to_vmem [thread:$0]  %s522_s3, 768, %s38_s17, [#allocation6], %s431_s12, %s431_s12, %s432_s13  }
  0x25   :  { %426 = dma.done.wait [#allocation4], 768  }
  0x26   :  { %427 = vsyncadd [#allocation4], 4294966528 }
  0x27   :  { %428 = dma.done.wait [#allocation6], 768  }
  0x28   :  { %429 = vsyncadd [#allocation6], 4294966528  ;;  %v434_v1 = vmov 0.0   ;;  %vm435_vm0 = vmmov 0   ;;  %v366_v2 = vld [vmem:[#allocation5] sm:$0xff]   ;;  %v367_v3 = vld [vmem:[#allocation3] sm:$0xff]  }
  0x29   :  { %327 = vmatprep.subr.bf16.mxu0 %v434_v1  ;;  %343 = vmatprep.subr.bf16.mxu1 %v434_v1  ;;  %v368_v4 = vld [vmem:[#allocation5 + $0x8] sm:$0xff]   ;;  %v369_v5 = vld [vmem:[#allocation3 + $0x8] sm:$0xff]   ;;  %v370_v6 = vld [vmem:[#allocation5 + $0x10] sm:$0xff]   ;;  %vm124_vm1 = vcmask 1044480   ;;  %vm125_vm2 = vcmask 1045504   ;;  %v436_v10 = vmov 65535  }
  0x2a   :  { %339 = vmatprep.mubr.msk.bf16.mxu0 %vm435_vm0, %v434_v1  ;;  %355 = vmatprep.mubr.msk.bf16.mxu1 %vm435_vm0, %v434_v1  ;;  %v371_v7 = vld [vmem:[#allocation3 + $0x10] sm:$0xff]   ;;  %v372_v8 = vld [vmem:[#allocation5 + $0x18] sm:$0xff]   ;;  %v373_v9 = vld [vmem:[#allocation3 + $0x18] sm:$0xff]   ;;  %v126_v11 = vsel %vm124_vm1, 4294967295, %v436_v10  ;;  %vm120_vm3 = vcmask 744448   ;;  %vm271_vm5 = vcmask 1041408  }
  0x2b   :  { %328 = vmatpush3.bf16.msra.mxu0 %v366_v2  ;;  %344 = vmatpush3.bf16.msra.mxu1 %v367_v3  ;;  %v374_v12 = vld [vmem:[#allocation5 + $0x20] sm:$0xff]   ;;  %v376_v13 = vld [vmem:[#allocation5 + $0x28] sm:$0x3f]   ;;  %v375_v14 = vld [vmem:[#allocation3 + $0x20] sm:$0xff]   ;;  %v127_v15 = vsel %vm125_vm2, %v126_v11, 0  ;;  %vm288_vm6 = vcmask 1024  }
  0x2c   :  { %329 = vmatprep.subr.bf16.mxu0 %v434_v1  ;;  %345 = vmatprep.subr.bf16.mxu1 %v434_v1  ;;  %v377_v16 = vld [vmem:[#allocation3 + $0x28] sm:$0x3f]   ;;  %v129_v17 = vand.u32 %v376_v13, %v127_v15  ;;  %v59_v18 = vld [vmem:[%s520_s1] sm:$0x3] }
  0x2d   :  { %v210_v19 = vand.u32 %v377_v16, %v127_v15  ;;  %v57_v20 = vld [vmem:[%s519_s0] sm:$0x3]  ;;  %v60_v21 = vpack.c.bf16 %v59_v18, %v59_v18 }
  0x2e   :  { %v58_v22 = vpack.c.bf16 %v57_v20, %v57_v20  ;;  %v310_v25 = vld [vmem:[%s523_s4] ss:$0 sm:$0xff] }
  0x2f   :  { %330 = vmatpush3.bf16.msra.mxu0 %v368_v4  ;;  %346 = vmatpush3.bf16.msra.mxu1 %v369_v5  ;;  %v311_v35 = vld [vmem:[%s524_s5] ss:$0 sm:$0xff] }
  0x30   :  { %331 = vmatprep.subr.bf16.mxu0 %v434_v1  ;;  %347 = vmatprep.subr.bf16.mxu1 %v434_v1  ;;  %v312_v39 = vld [vmem:[#allocation2] ss:$0 sm:$0xff] }
  0x33   :  { %332 = vmatpush3.bf16.msra.mxu0 %v370_v6  ;;  %348 = vmatpush3.bf16.msra.mxu1 %v371_v7 }
  0x34   :  { %333 = vmatprep.subr.bf16.mxu0 %v434_v1  ;;  %349 = vmatprep.subr.bf16.mxu1 %v434_v1 }
  0x37   :  { %334 = vmatpush3.bf16.msra.mxu0 %v372_v8  ;;  %350 = vmatpush3.bf16.msra.mxu1 %v373_v9 }
  0x38   :  { %335 = vmatprep.subr.bf16.mxu0 %v434_v1  ;;  %351 = vmatprep.subr.bf16.mxu1 %v434_v1 }
  0x3b   :  { %336 = vmatpush3.bf16.msra.mxu0 %v374_v12  ;;  %352 = vmatpush3.bf16.msra.mxu1 %v375_v14 }
  0x3c   :  { %337 = vmatprep.subr.bf16.mxu0 %v434_v1  ;;  %353 = vmatprep.subr.bf16.mxu1 %v434_v1 }
  0x3f   :  { %338 = vmatpush3.bf16.msra.mxu0 %v129_v17  ;;  %354 = vmatpush3.bf16.msra.mxu1 %v210_v19 }
  0x42   :  { %340 = vmatmul.mubr.msk.bf16.vlgmr.msra.gmra.mrb[0].mxu0 %vm120_vm3, %v60_v21  ;;  %356 = vmatmul.mubr.msk.bf16.vlgmr.msra.gmra.mrb[0].mxu1 %vm120_vm3, %v58_v22 }
 0x115   :  { %v165_v23 = vpop.f32.mrb[0].mxu0  ;;  %v246_v24 = vpop.f32.mrb[0].mxu1 }
 0x116   :  { %v341_v26 = vpop.f32.mrb[1].mxu0  ;;  %v247_v27 = vadd.f32 %v246_v24, %v165_v23  ;;  %v357_v28 = vpop.f32.mrb[1].mxu1 }
 0x117   :  { %v168_v29 = vpop.f32.mrb[2].mxu0  ;;  %v249_v30 = vpop.f32.mrb[2].mxu1 }
 0x118   :  { %v342_v31 = vpop.f32.mrb[3].mxu0  ;;  %v259_v32 = vadd.f32 %v310_v25, %v247_v27  ;;  %v358_v33 = vpop.f32.mrb[3].mxu1 }
 0x11a   :  { %v261_v34 = vmul.f32 0.2, %v259_v32  ;;  %vm260_vm4 = vcmp.gt.f32.partialorder %v259_v32, 0.0 }
 0x11c   :  { %v262_v36 = vsel %vm260_vm4, %v259_v32, %v261_v34 }
 0x11d   :  { %v270_v37 = vmul.f32 %v311_v35, %v262_v36 }
 0x11f   :  { %v272_v38 = vsel %vm271_vm5, %v270_v37, 0.0 }
 0x120   :  { %273 = vadd.xlane.f32.xlu0 %v272_v38 }
 0x1ad   :  { %v274_v40 = vpop.xlane.xlu0 %273 }
 0x1ae   :  { %v282_v41 = vadd.f32 %v312_v39, %v274_v40 }
 0x1b0   :  { %v283_v42 = vsub.f32 0.0, %v282_v41 }
 0x1b2   :  { %v284_v43 = vmul.f32 1.442695, %v283_v42 }
 0x1b4   :  { %378 = vpow2.f32 %v284_v43 }
 0x1be   :  { %v379_v44 = vpop.eup %378 }
 0x1bf   :  { %v286_v45 = vadd.f32 1.0, %v379_v44 }
 0x1c1   :  { %380 = vrcp.f32 %v286_v45 }
 0x1cb   :  { %v381_v46 = vpop.eup %380 }
 0x1cc   :  { %289 = vst.msk [vmem:[%s526_s7] sm:$0x3] %vm288_vm6, %v381_v46 }
 0x1cd   :  { %294 = vsyncpa [#allocation4], 1 }
 0x1ce   :  { %295 = vsyncpa [#allocation6], 1 }

</bundles_post_ra>
